<compile_context>
chip_gen: v7x
topology: tpu7x:2x2x1
jax: 0.10.0
libtpu: 0.0.40
codegen_flags: <defaults>
</compile_context>

<pallas_src>
import functools

import jax
import jax.numpy as jnp
from jax import lax
from jax.experimental import pallas as pl
from jax.experimental.pallas import tpu as pltpu


def _round_up(x, m):
    return ((x + m - 1) // m) * m


def _gram(x):
    # x: (N, D) -> (N, N) on the MXU, contracting the lane dim on both sides
    # (no explicit transpose / VMEM re-layout). HIGHEST precision keeps the
    # full multi-pass f32 matmul so the Gram identity matches the broadcast
    # reference to ~1e-6.
    return lax.dot_general(
        x, x,
        dimension_numbers=(((1,), (1,)), ((), ())),
        preferred_element_type=jnp.float32,
        precision=lax.Precision.HIGHEST,
    )


def _diversity_kernel(noises_ref, layer_ref, out_ref, acc_ref, *,
                      metric, d_layer, d_noise):
    k = pl.program_id(0)
    n_steps = pl.num_programs(0)
    n = acc_ref.shape[0]

    @pl.when(k == 0)
    def _init():
        acc_ref[...] = jnp.zeros_like(acc_ref)

    layer = layer_ref[...].astype(jnp.float32)          # (N, tile) feature slab

    if metric == "l1":
        # L1 has no Gram shortcut: the per-tile broadcast keeps the (N, N, T)
        # intermediate bounded by the tile width instead of the full Dl.
        # TODO(synk): for large N, row-block this with lax.fori_loop(unroll=True)
        # to bound vreg pressure.
        diff = layer[None, :, :] - layer[:, None, :]
        acc_ref[...] += jnp.sum(jnp.abs(diff), axis=-1)
    else:  # "l2" and "cosine" both accumulate the Gram matrix on the MXU.
        acc_ref[...] += _gram(layer)

    @pl.when(k == n_steps - 1)
    def _finalize():
        acc = acc_ref[...]                               # (N, N)
        row = lax.broadcasted_iota(jnp.int32, (n, n), 0)
        col = lax.broadcasted_iota(jnp.int32, (n, n), 1)
        eye = row == col
        diag = jnp.where(eye, acc, 0.0)                  # keep only G[i, i]

        if metric == "l1":
            layer_dist = acc / jnp.float32(d_layer)
        elif metric == "l2":
            sq_i = jnp.sum(diag, axis=1, keepdims=True)  # (N, 1)
            sq_j = jnp.sum(diag, axis=0, keepdims=True)  # (1, N)
            layer_dist = jnp.maximum(sq_i + sq_j - 2.0 * acc, 0.0)
            layer_dist = layer_dist / jnp.float32(d_layer)
        else:  # cosine: norms reused from the Gram diagonal (no extra pass).
            eps = jnp.float32(1e-8)
            sq_i = jnp.sum(diag, axis=1, keepdims=True)
            sq_j = jnp.sum(diag, axis=0, keepdims=True)
            norm_i = jnp.maximum(jnp.sqrt(sq_i), eps)
            norm_j = jnp.maximum(jnp.sqrt(sq_j), eps)
            # (approx=True would push this to the EUP but costs precision; the
            #  (N, N) tile is tiny so the exact reciprocal is fine.)
            layer_dist = 1.0 - acc * pl.reciprocal(norm_i * norm_j)

        # Noise pairwise distance (always 'l2'), also via the MXU Gram identity.
        noises = noises_ref[...].astype(jnp.float32)
        gn = _gram(noises)
        diag_n = jnp.where(eye, gn, 0.0)
        sqn_i = jnp.sum(diag_n, axis=1, keepdims=True)
        sqn_j = jnp.sum(diag_n, axis=0, keepdims=True)
        noise_dist = jnp.maximum(sqn_i + sqn_j - 2.0 * gn, 0.0)
        noise_dist = noise_dist / jnp.float32(d_noise)

        out_ref[0, 0] = jnp.exp(jnp.mean(-noise_dist * layer_dist))


def diversity_loss(noises, layer, metric="l2", *, max_tile_lanes=2048):
    """Pallas-backed DiversityLoss forward. Returns a scalar float32.

    max_tile_lanes: width (f32 lanes) of the per-grid-step layer feature tile.
    ~2048 is a safe default for v7x's 64 MiB VMEM; on v5e/v6e (128 MiB) it can
    be raised to 8192+ for very large Dl to better amortize per-step overhead.
    """
    if metric not in ("l1", "l2", "cosine"):
        raise ValueError(metric)
    if layer.ndim > 2:
        layer = layer.reshape((layer.shape[0], -1))

    n, d_layer = layer.shape
    n_noise, d_noise = noises.shape
    assert n_noise == n

    lane = 128
    tile = min(max_tile_lanes, _round_up(d_layer, lane))
    d_pad = _round_up(d_layer, tile)
    if d_pad != d_layer:
        # Zero padding is neutral for all three metrics (adds 0 to sums/Grams);
        # means are normalized by the true d_layer inside the kernel.
        layer = jnp.pad(layer, ((0, 0), (0, d_pad - d_layer)))
    num_tiles = d_pad // tile

    # NOTE: inputs are NOT up-cast here; they are DMA'd in their native dtype
    # and cast to f32 inside the kernel (halves HBM traffic for bf16 inputs).
    kernel = functools.partial(
        _diversity_kernel, metric=metric, d_layer=d_layer, d_noise=d_noise)

    cost = pl.CostEstimate(
        flops=2 * n * n * (d_pad + d_noise),
        transcendentals=1,
        bytes_accessed=(n * d_pad * layer.dtype.itemsize
                        + n * d_noise * noises.dtype.itemsize + 4),
    )

    out = pl.pallas_call(
        kernel,
        out_shape=jax.ShapeDtypeStruct((1, 1), jnp.float32),
        grid_spec=pltpu.PrefetchScalarGridSpec(
            num_scalar_prefetch=0,
            grid=(num_tiles,),
            in_specs=[
                # noises: small, fully resident (block index never changes).
                pl.BlockSpec((n, d_noise), lambda k: (0, 0)),
                # layer: one (N, tile) slab of the feature dim per grid step
                # -> double-buffered DMA overlaps with the MXU/VPU work.
                pl.BlockSpec((n, tile), lambda k: (0, k)),
            ],
            out_specs=pl.BlockSpec((1, 1), lambda k: (0, 0),
                                   memory_space=pltpu.MemorySpace.SMEM),
            scratch_shapes=[pltpu.VMEM((n, n), jnp.float32)],
        ),
        compiler_params=pltpu.CompilerParams(
            dimension_semantics=("arbitrary",),
            vmem_limit_bytes=32 * 1024 * 1024,
        ),
        cost_estimate=cost,
    )(noises, layer)
    return out[0, 0]


# ---- pure-JAX reference (mirrors the PyTorch module exactly) ----
def _reference(noises, layer, metric):
    if layer.ndim > 2:
        layer = layer.reshape((layer.shape[0], -1))

    def pairwise(t, how):
        t1 = t[None, :, :]   # expand -> t1[i, j] = t[j]
        t2 = t[:, None, :]   # unsqueeze(1) -> t2[i, j] = t[i]
        if how == "l1":
            return jnp.mean(jnp.abs(t1 - t2), axis=2)
        if how == "l2":
            return jnp.mean((t1 - t2) ** 2, axis=2)
        if how == "cosine":
            eps = 1e-8
            num = jnp.sum(t1 * t2, axis=2)
            den = jnp.maximum(jnp.linalg.norm(t, axis=1), eps)
            return 1.0 - num / (den[None, :] * den[:, None])
        raise ValueError(how)

    layer_dist = pairwise(layer, metric)
    noise_dist = pairwise(noises, "l2")
    return jnp.exp(jnp.mean(-noise_dist * layer_dist))


if __name__ == "__main__":
    key = jax.random.PRNGKey(0)
    k1, k2, k3 = jax.random.split(key, 3)

    N, Dn = 4, 32                                            # noises: (batch, noise_dim)
    noises = jax.random.normal(k1, (N, Dn), dtype=jnp.float32)
    layer_a = jax.random.normal(k2, (N, 4, 16, 16), dtype=jnp.float32)  # Dl = 1024
    layer_b = jax.random.normal(k3, (N, 3, 10, 10), dtype=jnp.float32)  # Dl = 300 (pad path)

    ok = True
    cases = [
        (layer_a, 2048),   # single tile
        (layer_a, 256),    # 4 tiles -> exercises the grid accumulator
        (layer_b, 2048),   # non-multiple-of-128 Dl -> exercises zero padding
    ]
    for metric in ("l1", "l2", "cosine"):
        for layer, tile in cases:
            out = jax.block_until_ready(
                diversity_loss(noises, layer, metric=metric, max_tile_lanes=tile))
            ref = jax.block_until_ready(_reference(noises, layer, metric))
            if not jnp.allclose(out, ref, rtol=1e-4, atol=1e-5):
                ok = False
                print(f"MISMATCH metric={metric} tile={tile} out={out} ref={ref}")

    if ok:
        print("KERNEL_OK")
</pallas_src>

<mosaic_0001>
module attributes {stable_mosaic.version = 11 : i64} {
  func.func @_diversity_kernel(%arg0: i32, %arg1: memref<4x32xf32, #tpu.memory_space<vmem>>, %arg2: memref<4x1024xf32, #tpu.memory_space<vmem>>, %arg3: memref<1x1xf32, #tpu.memory_space<smem>>, %arg4: memref<4x4xf32, #tpu.memory_space<vmem>>) attributes {dimension_semantics = [#tpu.dimension_semantics<arbitrary>], iteration_bounds = array<i64: 1>, scalar_prefetch = 0 : i64, scratch_operands = 1 : i64, tpu.core_type = #tpu.core_type<tc>, window_params = [{pipeline_mode = #tpu.pipeline_mode<synchronous>, transform_indices = @transform_0, window_bounds = array<i64: 4, 32>}, {transform_indices = @transform_1, window_bounds = array<i64: 4, 1024>}, {transform_indices = @transform_2, window_bounds = array<i64: 1, 1>}]} {
    %c0_i32 = arith.constant 0 : i32
    %0 = arith.cmpi eq, %arg0, %c0_i32 : i32
    %1 = arith.extui %0 : i1 to i32
    %c0_i32_0 = arith.constant 0 : i32
    %2 = arith.cmpi ne, %1, %c0_i32_0 : i32
    scf.if %2 {
      %cst_8 = arith.constant 0.000000e+00 : f32
      %17 = vector.broadcast %cst_8 : f32 to vector<4x4xf32>
      %c0_9 = arith.constant 0 : index
      %c0_10 = arith.constant 0 : index
      %18 = vector.load %arg4[%c0_9, %c0_10] : memref<4x4xf32, #tpu.memory_space<vmem>>, vector<4x4xf32>
      tpu.vector_store %arg4[%c0_9, %c0_10], %17 {strides = array<i32>} : memref<4x4xf32, #tpu.memory_space<vmem>>, vector<4x4xf32>,
    } else {
    }
    %c0 = arith.constant 0 : index
    %c0_1 = arith.constant 0 : index
    %3 = vector.load %arg2[%c0, %c0_1] : memref<4x1024xf32, #tpu.memory_space<vmem>>, vector<4x1024xf32>
    %4 = vector.shape_cast %3 : vector<4x1024xf32> to vector<1x4x1024xf32>
    %5 = vector.shape_cast %3 : vector<4x1024xf32> to vector<4x1x1024xf32>
    %6 = vector.broadcast %4 : vector<1x4x1024xf32> to vector<4x4x1024xf32>
    %7 = vector.broadcast %5 : vector<4x1x1024xf32> to vector<4x4x1024xf32>
    %8 = arith.subf %6, %7 : vector<4x4x1024xf32>
    %c0_2 = arith.constant 0 : index
    %c0_3 = arith.constant 0 : index
    %9 = vector.load %arg4[%c0_2, %c0_3] : memref<4x4xf32, #tpu.memory_space<vmem>>, vector<4x4xf32>
    %10 = math.absf %8 : vector<4x4x1024xf32>
    %cst = arith.constant dense<0.000000e+00> : vector<4x4xf32>
    %11 = vector.multi_reduction <add>, %10, %cst [2] : vector<4x4x1024xf32> to vector<4x4xf32>
    %12 = arith.addf %9, %11 : vector<4x4xf32>
    %c0_4 = arith.constant 0 : index
    %c0_5 = arith.constant 0 : index
    %13 = vector.load %arg4[%c0_4, %c0_5] : memref<4x4xf32, #tpu.memory_space<vmem>>, vector<4x4xf32>
    tpu.vector_store %arg4[%c0_4, %c0_5], %12 {strides = array<i32>} : memref<4x4xf32, #tpu.memory_space<vmem>>, vector<4x4xf32>,
    %c0_i32_6 = arith.constant 0 : i32
    %14 = arith.cmpi eq, %arg0, %c0_i32_6 : i32
    %15 = arith.extui %14 : i1 to i32
    %c0_i32_7 = arith.constant 0 : i32
    %16 = arith.cmpi ne, %15, %c0_i32_7 : i32
    scf.if %16 {
      %c0_8 = arith.constant 0 : index
      %c0_9 = arith.constant 0 : index
      %17 = vector.load %arg4[%c0_8, %c0_9] : memref<4x4xf32, #tpu.memory_space<vmem>>, vector<4x4xf32>
      %18 = tpu.iota {dimensions = array<i32: 0>} : vector<4x4xi32>
      %19 = tpu.iota {dimensions = array<i32: 1>} : vector<4x4xi32>
      %20 = arith.cmpi eq, %18, %19 : vector<4x4xi32>
      %cst_10 = arith.constant 1.024000e+03 : f32
      %21 = vector.broadcast %cst_10 : f32 to vector<4x4xf32>
      %22 = arith.divf %17, %21 : vector<4x4xf32>
      %c0_11 = arith.constant 0 : index
      %c0_12 = arith.constant 0 : index
      %23 = vector.load %arg1[%c0_11, %c0_12] : memref<4x32xf32, #tpu.memory_space<vmem>>, vector<4x32xf32>
      %cst_13 = arith.constant dense<0.000000e+00> : vector<4x4xf32>
      %24 = tpu.matmul %23, %23, %cst_13 {dimension_numbers = #tpu.dot_dimension_numbers<[1], [1], [0], [0], [0, 0, 1, 0], [], []>, precision = #tpu.contract_precision<fp32>} : vector<4x32xf32>, vector<4x32xf32>, vector<4x4xf32> -> vector<4x4xf32>
      %cst_14 = arith.constant 0.000000e+00 : f32
      %25 = vector.broadcast %cst_14 : f32 to vector<4x4xf32>
      %26 = arith.select %20, %24, %25 : vector<4x4xi1>, vector<4x4xf32>
      %cst_15 = arith.constant dense<0.000000e+00> : vector<4xf32>
      %27 = vector.multi_reduction <add>, %26, %cst_15 [1] : vector<4x4xf32> to vector<4xf32>
      %28 = vector.shape_cast %27 : vector<4xf32> to vector<4x1xf32>
      %cst_16 = arith.constant dense<0.000000e+00> : vector<4xf32>
      %29 = vector.multi_reduction <add>, %26, %cst_16 [0] : vector<4x4xf32> to vector<4xf32>
      %30 = vector.shape_cast %29 : vector<4xf32> to vector<1x4xf32>
      %31 = vector.broadcast %28 : vector<4x1xf32> to vector<4x4xf32>
      %32 = vector.broadcast %30 : vector<1x4xf32> to vector<4x4xf32>
      %33 = arith.addf %31, %32 : vector<4x4xf32>
      %cst_17 = arith.constant 2.000000e+00 : f32
      %34 = vector.broadcast %cst_17 : f32 to vector<4x4xf32>
      %35 = arith.mulf %34, %24 : vector<4x4xf32>
      %36 = arith.subf %33, %35 : vector<4x4xf32>
      %cst_18 = arith.constant 0.000000e+00 : f32
      %37 = vector.broadcast %cst_18 : f32 to vector<4x4xf32>
      %38 = arith.maximumf %36, %37 : vector<4x4xf32>
      %cst_19 = arith.constant 3.200000e+01 : f32
      %39 = vector.broadcast %cst_19 : f32 to vector<4x4xf32>
      %40 = arith.divf %38, %39 : vector<4x4xf32>
      %cst_20 = arith.constant 0.000000e+00 : f32
      %41 = vector.broadcast %cst_20 : f32 to vector<4x4xf32>
      %42 = arith.subf %41, %40 : vector<4x4xf32>
      %43 = arith.mulf %42, %22 : vector<4x4xf32>
      %44 = vector.shape_cast %43 : vector<4x4xf32> to vector<1x4x4xf32>
      %cst_21 = arith.constant dense<0.000000e+00> : vector<1xf32>
      %45 = vector.multi_reduction <add>, %44, %cst_21 [1, 2] : vector<1x4x4xf32> to vector<1xf32>
      %46 = vector.shape_cast %45 : vector<1xf32> to vector<1x1x1xf32>
      %47 = vector.extract %46[0, 0, 0] : f32 from vector<1x1x1xf32>
      %cst_22 = arith.constant 1.600000e+01 : f32
      %48 = arith.divf %47, %cst_22 : f32
      %49 = math.exp %48 : f32
      %c0_23 = arith.constant 0 : index
      %c0_24 = arith.constant 0 : index
      %50 = memref.load %arg3[%c0_23, %c0_24] : memref<1x1xf32, #tpu.memory_space<smem>>
      memref.store %49, %arg3[%c0_23, %c0_24] : memref<1x1xf32, #tpu.memory_space<smem>>
    } else {
    }
    return
  }
  func.func @transform_0(%arg0: i32) -> (i32, i32) {
    %c0_i32 = arith.constant 0 : i32
    %c0_i32_0 = arith.constant 0 : i32
    %c0_i32_1 = arith.constant 0 : i32
    return %c0_i32, %c0_i32_0 : i32, i32
  }
  func.func @transform_1(%arg0: i32) -> (i32, i32) {
    %c0_i32 = arith.constant 0 : i32
    %c0_i32_0 = arith.constant 0 : i32
    return %c0_i32, %arg0 : i32, i32
  }
  func.func @transform_2(%arg0: i32) -> (i32, i32) {
    %c0_i32 = arith.constant 0 : i32
    %c0_i32_0 = arith.constant 0 : i32
    %c0_i32_1 = arith.constant 0 : i32
    return %c0_i32, %c0_i32_0 : i32, i32
  }
}

</mosaic_0001>

<bundles_post_ra>
// kernel: tpu_custom_call.1
= control target key start
LH: loop header
LB: loop body
LE: loop exit
PB: predicated region body
PF: predicated region fallthrough
CT: control target
= control target key end

     0   :  { %7 = vsyncpa [#allocation4], 0  ;;  %s1317_s0 = inlined_call_operand.hbm [shape: f32[4,32], index: 0, kind: input, shape index: {}]   ;;  %s1318_s1 = inlined_call_operand.hbm [shape: f32[4,1024], index: 1, kind: input, shape index: {}]   ;;  %s1319_s2 = inlined_call_operand.hbm [shape: f32[1,1], index: 2, kind: output, shape index: {}]  }
   0x1   :  { %8 = vsyncpa [#allocation7], 0 }
   0x2   :  { %9 = vsyncpa [#allocation5], 0  ;;  %s1091_s9 = smov [#allocation3]   ;;  %s1092_s11 = smov [#allocation6]  }
   0x3   :  { %s16_s10 = sshll.u32 %s1091_s9, 4  ;;  %s26_s12 = sshll.u32 %s1092_s11, 4  ;;  %s17_s10 = int_to_ptr.vmem [resolvable:$true] %s16_s10  ;;  %s27_s12 = int_to_ptr.vmem [resolvable:$true] %s26_s12 }
   0x4   :  { %s1031_s15 = scalar_lea.hbm %s1317_s0, 64 }
   0x5   :  { %p1032_p0 = scmp.ne.s32.totalorder %s1317_s0, %s1031_s15  ;;  %p1035_p1 = scmp.lt.u32.totalorder %s1031_s15, %s1317_s0 }
   0x7   :  { %p1037_p2 = pnand %p1035_p1, %p1032_p0 }
   0x9   :  { %1040 = shalt.err (!%p1037_p2)
}
   0xa   :  { %s1041_s20 = scalar_lea.vmem %s17_s10, 64  ;;  %p1046_p4 = scmp.lt.s32.totalorder %s17_s10, %s17_s10 }
   0xb   :  { %p1042_p3 = scmp.ne.s32.totalorder %s17_s10, %s1041_s20  ;;  %p1047_p5 = scmp.lt.s32.totalorder %s1041_s20, %s1041_s20 }
   0xd   :  { %p1048_p6 = por %p1047_p5, %p1046_p4 }
   0xf   :  { %p1049_p7 = pnand %p1048_p6, %p1042_p3 }
  0x11   :  { %1052 = shalt.err (!%p1049_p7)
}
  0x12   :  { %19 = dma.hbm_to_vmem [thread:$0]  %s1317_s0, 64, %s17_s10, [#allocation4]  }
  0x13   :  { %s1053_s25 = scalar_lea.hbm %s1318_s1, 512 }
  0x14   :  { %p1054_p8 = scmp.ne.s32.totalorder %s1318_s1, %s1053_s25  ;;  %p1057_p9 = scmp.lt.u32.totalorder %s1053_s25, %s1318_s1 }
  0x16   :  { %p1059_p10 = pnand %p1057_p9, %p1054_p8 }
  0x18   :  { %1062 = shalt.err (!%p1059_p10)
}
  0x19   :  { %s1063_s30 = scalar_lea.vmem %s27_s12, 512  ;;  %p1068_p12 = scmp.lt.s32.totalorder %s27_s12, %s27_s12 }
  0x1a   :  { %p1064_p11 = scmp.ne.s32.totalorder %s27_s12, %s1063_s30  ;;  %p1069_p13 = scmp.lt.s32.totalorder %s1063_s30, %s1063_s30 }
  0x1c   :  { %p1070_p0 = por %p1069_p13, %p1068_p12 }
  0x1e   :  { %p1071_p1 = pnand %p1070_p0, %p1064_p11 }
  0x20   :  { %1074 = shalt.err (!%p1071_p1)
}
  0x21   :  { %29 = dma.hbm_to_vmem [thread:$0]  %s1318_s1, 512, %s27_s12, [#allocation7]  }
  0x22   :  { %1085 = dma.done.wait [#allocation4], 64  }
  0x23   :  { %1086 = vsyncadd [#allocation4], 4294967232 }
  0x24   :  { %1087 = dma.done.wait [#allocation7], 512  }
  0x25   :  { %1088 = vsyncadd [#allocation7], 4294966784  ;;  %v53_v0 = vlaneseq  ;;  %v1093_v1 = vmov 0.0   ;;  %vm1094_vm0 = vmmov 0   ;;  %v1095_v2 = vmov 1966171168  }
  0x26   :  { %995 = vmatprep.subr.mxu0 %v1093_v1  ;;  %980 = vmatprep.subr.mxu1 %v1093_v1  ;;  %v51_v3 = vunpack.c.l.s4 %v1095_v2  ;;  %vm466_vm1 = vcmask 261120   ;;  %v465_v7 = vld [vmem:[#allocation3] sm:$0xf]  ;;  %v1146_v8 = vld [vmem:[#allocation6] sm:$0xff]  ;;  %v1148_v9 = vld [vmem:[#allocation6 + $0x8] sm:$0xff]  ;;  %vm355_vm2 = vcmask 1043456  }
  0x27   :  { %997 = vmatprep.mubr.msk.f32.mxu0 %vm1094_vm0, %v1093_v1  ;;  %982 = vmatprep.mubr.msk.f32.mxu1 %vm1094_vm0, %v1093_v1  ;;  %v1143_v4 = vshrl.u32 %v53_v0, 7  ;;  %v468_v10 = vsel %vm466_vm1, %v465_v7, 0  ;;  %v1150_v11 = vld [vmem:[#allocation6 + $0x10] sm:$0xff]  ;;  %v1152_v12 = vld [vmem:[#allocation6 + $0x18] sm:$0xff]  ;;  %vm40_vm3 = vcmask 27648   ;;  %vm446_vm5 = vcmask 1041409  }
  0x28   :  { %v52_v5 = vunpack.c.0.s8 %v51_v3  ;;  %v1156_v15 = vand.u32 4294901760, %v468_v10  ;;  %41 = vst.msk [vmem:[#allocation2] sm:$0xf] %vm40_vm3, %v1093_v1  ;;  %vm448_vm6 = vcmask 1042434   ;;  %vm450_vm7 = vcmask 1043459   ;;  %s1075_s8 = scalar_lea.hbm %s1319_s2, 16 }
  0x29   :  { %v1168_v24 = vsub.s32 0, %v1143_v4  ;;  %v1172_v27 = vsub.s32 1, %v1143_v4  ;;  %v1175_v28 = vsub.s32 2, %v1143_v4  ;;  %v1178_v29 = vsub.s32 3, %v1143_v4  ;;  %p1076_p2 = scmp.ne.s32.totalorder %s1319_s2, %s1075_s8  ;;  %p1079_p3 = scmp.lt.u32.totalorder %s1075_s8, %s1319_s2 }
  0x2a   :  { %v55_v6 = vsub.s32 %v52_v5, %v1143_v4  ;;  %996 = vmatpush3.xpose.msra.mxu0 %v1156_v15  ;;  %981 = vmatpush3.xpose.msra.mxu1 %v1156_v15  ;;  %v1163_v19 = vsub.f32 %v468_v10, %v1156_v15  ;;  %v1181_v30 = vsub.s32 4, %v1143_v4  ;;  %v1184_v31 = vsub.s32 5, %v1143_v4 }
  0x2b   :  { %985 = vmatprep.subr.mxu1 %v1093_v1  ;;  %1000 = vmatprep.subr.mxu0 %v1093_v1  ;;  %v1187_v32 = vsub.s32 6, %v1143_v4  ;;  %v1191_v36 = vsub.s32 7, %v1143_v4  ;;  %p1081_p4 = pnand %p1079_p3, %p1076_p2 }
  0x2c   :  { %v56_v13 = vrot.slane %v1146_v8, %v55_v6  ;;  %v63_v14 = vrot.slane %v1148_v9, %v55_v6  ;;  %v70_v16 = vrot.slane %v1150_v11, %v55_v6  ;;  %v77_v17 = vrot.slane %v1152_v12, %v55_v6 }
  0x2d   :  { %v538_v25 = vand.u32 4294901760, %v1163_v19 }
  0x2e   :  { %v78_v18 = vcombine.low %v56_v13, %v63_v14  ;;  %v80_v20 = vcombine.low %v70_v16, %v77_v17  ;;  %v79_v21 = vcombine.high %v56_v13, %v63_v14  ;;  %v81_v22 = vcombine.high %v70_v16, %v77_v17 }
  0x2f   :  { %998 = vmatmul.mubr.f32.vlgmr.msra.gmra.mrb[0].mxu0 %v538_v25  ;;  %v539_v33 = vsub.f32 %v1163_v19, %v538_v25 }
  0x30   :  { %v88_v23 = vrot.slane %v78_v18, %v55_v6  ;;  %v102_v26 = vrot.slane %v80_v20, %v55_v6  ;;  %1001 = vmatpush3.xpose.msra.mxu0 %v538_v25  ;;  %1002 = vmatprep.mubr.msk.f32.mxu0 %vm1094_vm0, %v1093_v1  ;;  %v1195_v37 = vrot.slane %v79_v21, %v55_v6 }
  0x31   :  { %v1197_v38 = vrot.slane %v81_v22, %v55_v6  ;;  %v540_v39 = vand.u32 4294901760, %v539_v33  ;;  %1005 = vmatprep.subr.mxu0 %v1093_v1 }
  0x32   :  { %v110_v34 = vcombine.low %v88_v23, %v102_v26  ;;  %v111_v35 = vcombine.high %v88_v23, %v102_v26 }
  0x33   :  { %983 = vmatmul.mubr.f32.vlgmr.msra.gmra.mrb[0].mxu1 %v540_v39  ;;  %v112_v20 = vcombine.low %v1195_v37, %v1197_v38 }
  0x34   :  { %v117_v40 = vrot.slane %v110_v34, %v1168_v24  ;;  %v121_v41 = vrot.slane %v110_v34, %v1172_v27  ;;  %v125_v42 = vrot.slane %v110_v34, %v1175_v28  ;;  %v129_v43 = vrot.slane %v110_v34, %v1178_v29  ;;  %986 = vmatpush3.xpose.msra.mxu1 %v540_v39 }
  0x35   :  { %v133_v44 = vrot.slane %v110_v34, %v1181_v30  ;;  %v137_v45 = vrot.slane %v110_v34, %v1184_v31  ;;  %v141_v46 = vrot.slane %v110_v34, %v1187_v32  ;;  %v145_v47 = vrot.slane %v110_v34, %v1191_v36  ;;  %987 = vmatprep.mubr.msk.f32.mxu1 %vm1094_vm0, %v1093_v1 }
  0x36   :  { %v242_v48 = vcombine.low %v117_v40, %v121_v41  ;;  %v181_v49 = vrot.slane %v111_v35, %v1168_v24  ;;  %v185_v50 = vrot.slane %v111_v35, %v1172_v27  ;;  %v243_v51 = vcombine.low %v125_v42, %v129_v43  ;;  %990 = vmatprep.subr.mxu1 %v1093_v1 }
  0x37   :  { %v244_v52 = vcombine.low %v133_v44, %v137_v45  ;;  %v189_v53 = vrot.slane %v111_v35, %v1175_v28  ;;  %v245_v54 = vcombine.low %v141_v46, %v145_v47  ;;  %v193_v56 = vrot.slane %v111_v35, %v1178_v29  ;;  %1003 = vmatmul.mubr.f32.vlgmr.msra.gmra.mrb[0].mxu0 %v1156_v15 }
  0x38   :  { %v274_v55 = vsub.f32 %v1146_v8, %v242_v48  ;;  %v197_v57 = vrot.slane %v111_v35, %v1181_v30  ;;  %v275_v58 = vsub.f32 %v1148_v9, %v243_v51  ;;  %v201_v60 = vrot.slane %v111_v35, %v1184_v31  ;;  %1006 = vmatpush3.xpose.msra.mxu0 %v1156_v15 }
  0x39   :  { %v276_v59 = vsub.f32 %v1150_v11, %v244_v52  ;;  %v205_v61 = vrot.slane %v111_v35, %v1187_v32  ;;  %v277_v62 = vsub.f32 %v1152_v12, %v245_v54  ;;  %v209_v2 = vrot.slane %v111_v35, %v1191_v36  ;;  %1007 = vmatprep.mubr.msk.f32.mxu0 %vm1094_vm0, %v1093_v1 }
  0x3a   :  { %v291_v63 = vand.u32 2147483647, %v274_v55  ;;  %v250_v3 = vcombine.low %v181_v49, %v185_v50  ;;  %v292_v5 = vand.u32 2147483647, %v275_v58  ;;  %v251_v7 = vcombine.low %v189_v53, %v193_v56 }
  0x3b   :  { %v293_v6 = vand.u32 2147483647, %v276_v59  ;;  %v252_v14 = vcombine.low %v197_v57, %v201_v60  ;;  %v294_v16 = vand.u32 2147483647, %v277_v62  ;;  %v253_v18 = vcombine.low %v205_v61, %v209_v2  ;;  %988 = vmatmul.mubr.f32.vlgmr.msra.gmra.mrb[0].mxu1 %v1156_v15 }
  0x3c   :  { %v323_v10 = vcombine.high %v291_v63, %v291_v63  ;;  %v356_v13 = vsel %vm355_vm2, %v291_v63, 0.0  ;;  %v324_v17 = vcombine.high %v292_v5, %v292_v5  ;;  %v359_v22 = vsel %vm355_vm2, %v292_v5, 0.0  ;;  %991 = vmatpush3.xpose.msra.mxu1 %v1163_v19  ;;  %992 = vmatprep.mubr.msk.f32.mxu1 %vm1094_vm0, %v1093_v1 }
  0x3d   :  { %v282_v23 = vsub.f32 %v1146_v8, %v250_v3  ;;  %v325_v25 = vcombine.high %v293_v6, %v293_v6  ;;  %v283_v33 = vsub.f32 %v1148_v9, %v251_v7  ;;  %v363_v35 = vsel %vm355_vm2, %v293_v6, 0.0 }
  0x3e   :  { %v357_v21 = vsel %vm355_vm2, %v323_v10, 0.0  ;;  %v361_v34 = vsel %vm355_vm2, %v324_v17, 0.0  ;;  %v284_v39 = vsub.f32 %v1150_v11, %v252_v14  ;;  %v326_v41 = vcombine.high %v294_v16, %v294_v16 }
  0x3f   :  { %v358_v26 = vadd.f32 %v357_v21, %v356_v13  ;;  %v299_v40 = vand.u32 2147483647, %v282_v23  ;;  %v285_v43 = vsub.f32 %v1152_v12, %v253_v18  ;;  %v300_v44 = vand.u32 2147483647, %v283_v33  ;;  %1008 = vmatmul.mubr.f32.vlgmr.msra.gmra.mrb[0].mxu0 %v1156_v15 }
  0x40   :  { %v367_v45 = vsel %vm355_vm2, %v294_v16, 0.0  ;;  %v301_v46 = vand.u32 2147483647, %v284_v39  ;;  %v365_v50 = vsel %vm355_vm2, %v325_v25, 0.0  ;;  %v149_v52 = vrot.slane %v112_v20, %v1168_v24 }
  0x41   :  { %v360_v42 = vadd.f32 %v359_v22, %v358_v26  ;;  %v331_v47 = vcombine.high %v299_v40, %v299_v40  ;;  %v390_v48 = vsel %vm355_vm2, %v299_v40, 0.0  ;;  %v332_v51 = vcombine.high %v300_v44, %v300_v44 }
  0x42   :  { %v393_v54 = vsel %vm355_vm2, %v300_v44, 0.0  ;;  %v153_v55 = vrot.slane %v112_v20, %v1172_v27  ;;  %v157_v15 = vrot.slane %v112_v20, %v1175_v28  ;;  %v369_v57 = vsel %vm355_vm2, %v326_v41, 0.0 }
  0x43   :  { %v362_v49 = vadd.f32 %v361_v34, %v360_v42  ;;  %v391_v53 = vsel %vm355_vm2, %v331_v47, 0.0  ;;  %v302_v58 = vand.u32 2147483647, %v285_v43  ;;  %993 = vmatmul.mubr.f32.vlgmr.msra.gmra.mrb[0].mxu1 %v1163_v19  ;;  %v333_v60 = vcombine.high %v301_v46, %v301_v46 }
  0x44   :  { %v392_v59 = vadd.f32 %v391_v53, %v390_v48  ;;  %v395_v61 = vsel %vm355_vm2, %v332_v51, 0.0  ;;  %v161_v62 = vrot.slane %v112_v20, %v1178_v29  ;;  %v165_v63 = vrot.slane %v112_v20, %v1181_v30 }
  0x45   :  { %v364_v56 = vadd.f32 %v363_v35, %v362_v49  ;;  %v169_v5 = vrot.slane %v112_v20, %v1184_v31  ;;  %v173_v6 = vrot.slane %v112_v20, %v1187_v32  ;;  %v397_v7 = vsel %vm355_vm2, %v301_v46, 0.0 }
  0x46   :  { %v394_v3 = vadd.f32 %v393_v54, %v392_v59  ;;  %v177_v10 = vrot.slane %v112_v20, %v1191_v36  ;;  %v246_v13 = vcombine.low %v149_v52, %v153_v55  ;;  %v247_v14 = vcombine.low %v157_v15, %v161_v62 }
  0x47   :  { %v366_v2 = vadd.f32 %v365_v50, %v364_v56  ;;  %v334_v16 = vcombine.high %v302_v58, %v302_v58  ;;  %v248_v18 = vcombine.low %v165_v63, %v169_v5  ;;  %v399_v21 = vsel %vm355_vm2, %v333_v60, 0.0 }
  0x48   :  { %v396_v17 = vadd.f32 %v395_v61, %v394_v3  ;;  %v249_v22 = vcombine.low %v173_v6, %v177_v10  ;;  %v278_v23 = vsub.f32 %v1146_v8, %v246_v13  ;;  %v279_v25 = vsub.f32 %v1148_v9, %v247_v14 }
  0x49   :  { %v368_v19 = vadd.f32 %v367_v45, %v366_v2  ;;  %v280_v34 = vsub.f32 %v1150_v11, %v248_v18  ;;  %v401_v35 = vsel %vm355_vm2, %v302_v58, 0.0  ;;  %v403_v41 = vsel %vm355_vm2, %v334_v16, 0.0 }
  0x4a   :  { %v398_v33 = vadd.f32 %v397_v7, %v396_v17  ;;  %v295_v20 = vand.u32 2147483647, %v278_v23  ;;  %v296_v39 = vand.u32 2147483647, %v279_v25  ;;  %v281_v42 = vsub.f32 %v1152_v12, %v249_v22 }
  0x4b   :  { %v370_v26 = vadd.f32 %v369_v57, %v368_v19  ;;  %v297_v43 = vand.u32 2147483647, %v280_v34  ;;  %v113_v3 = vcombine.high %v1195_v37, %v1197_v38 }
  0x4c   :  { %v400_v40 = vadd.f32 %v399_v21, %v398_v33  ;;  %v327_v44 = vcombine.high %v295_v20, %v295_v20  ;;  %v328_v45 = vcombine.high %v296_v39, %v296_v39  ;;  %v373_v46 = vsel %vm355_vm2, %v295_v20, 0.0 }
  0x4d   :  { %371 = vadd.xlane.f32.xlu0 %v370_v26  ;;  %v376_v49 = vsel %vm355_vm2, %v296_v39, 0.0  ;;  %v298_v52 = vand.u32 2147483647, %v281_v42  ;;  %v329_v53 = vcombine.high %v297_v43, %v297_v43  ;;  %v380_v15 = vsel %vm355_vm2, %v297_v43, 0.0 }
  0x4e   :  { %v402_v47 = vadd.f32 %v401_v35, %v400_v40  ;;  %v374_v48 = vsel %vm355_vm2, %v327_v44, 0.0  ;;  %v378_v54 = vsel %vm355_vm2, %v328_v45, 0.0  ;;  %v213_v5 = vrot.slane %v113_v3, %v1168_v24 }
  0x4f   :  { %v375_v51 = vadd.f32 %v374_v48, %v373_v46  ;;  %v330_v57 = vcombine.high %v298_v52, %v298_v52  ;;  %v382_v58 = vsel %vm355_vm2, %v329_v53, 0.0  ;;  %v384_v60 = vsel %vm355_vm2, %v298_v52, 0.0 }
  0x50   :  { %v404_v50 = vadd.f32 %v403_v41, %v402_v47  ;;  %v217_v6 = vrot.slane %v113_v3, %v1172_v27  ;;  %v221_v10 = vrot.slane %v113_v3, %v1175_v28  ;;  %v225_v13 = vrot.slane %v113_v3, %v1178_v29 }
  0x51   :  { %v377_v55 = vadd.f32 %v376_v49, %v375_v51  ;;  %v386_v62 = vsel %vm355_vm2, %v330_v57, 0.0  ;;  %v229_v17 = vrot.slane %v113_v3, %v1181_v30  ;;  %v233_v18 = vrot.slane %v113_v3, %v1184_v31 }
  0x52   :  { %405 = vadd.xlane.f32.xlu1 %v404_v50  ;;  %v254_v7 = vcombine.low %v213_v5, %v217_v6  ;;  %v255_v19 = vcombine.low %v221_v10, %v225_v13  ;;  %v237_v29 = vrot.slane %v113_v3, %v1187_v32  ;;  %v429_v47 = vand.u32 127, %v53_v0 }
  0x53   :  { %v379_v56 = vadd.f32 %v378_v54, %v377_v55  ;;  %v256_v38 = vcombine.low %v229_v17, %v233_v18 }
  0x54   :  { %v286_v14 = vsub.f32 %v1146_v8, %v254_v7  ;;  %v287_v21 = vsub.f32 %v1148_v9, %v255_v19  ;;  %v241_v8 = vrot.slane %v113_v3, %v1191_v36  ;;  %v432_v49 = vsub.s32 %v429_v47, %v1143_v4 }
  0x55   :  { %v381_v59 = vadd.f32 %v380_v15, %v379_v56  ;;  %v288_v23 = vsub.f32 %v1150_v11, %v256_v38  ;;  %vm462_vm4 = vcmp.eq.s32.totalorder %v1143_v4, %v429_v47 }
  0x56   :  { %v303_v16 = vand.u32 2147483647, %v286_v14  ;;  %v304_v24 = vand.u32 2147483647, %v287_v21  ;;  %v257_v31 = vcombine.low %v237_v29, %v241_v8 }
  0x57   :  { %v383_v61 = vadd.f32 %v382_v58, %v381_v59  ;;  %v305_v26 = vand.u32 2147483647, %v288_v23 }
  0x58   :  { %v335_v37 = vcombine.high %v303_v16, %v303_v16  ;;  %v407_v27 = vsel %vm355_vm2, %v303_v16, 0.0  ;;  %v336_v25 = vcombine.high %v304_v24, %v304_v24  ;;  %v410_v30 = vsel %vm355_vm2, %v304_v24, 0.0 }
  0x59   :  { %v385_v63 = vadd.f32 %v384_v60, %v383_v61  ;;  %v289_v34 = vsub.f32 %v1152_v12, %v257_v31  ;;  %v337_v35 = vcombine.high %v305_v26, %v305_v26  ;;  %v414_v39 = vsel %vm355_vm2, %v305_v26, 0.0  ;;  %v290_v60 = vld [vmem:[#allocation2] sm:$0xf] }
  0x5a   :  { %v408_v22 = vsel %vm355_vm2, %v335_v37, 0.0  ;;  %v412_v33 = vsel %vm355_vm2, %v336_v25, 0.0 }
  0x5b   :  { %v387_v2 = vadd.f32 %v386_v62, %v385_v63  ;;  %v409_v28 = vadd.f32 %v408_v22, %v407_v27  ;;  %v306_v40 = vand.u32 2147483647, %v289_v34  ;;  %v416_v36 = vsel %vm355_vm2, %v337_v35, 0.0 }
  0x5d   :  { %388 = vadd.xlane.f32.xlu0 %v387_v2  ;;  %v411_v9 = vadd.f32 %v410_v30, %v409_v28  ;;  %v338_v41 = vcombine.high %v306_v40, %v306_v40  ;;  %v418_v42 = vsel %vm355_vm2, %v306_v40, 0.0 }
  0x5f   :  { %v413_v20 = vadd.f32 %v412_v33, %v411_v9  ;;  %v420_v44 = vsel %vm355_vm2, %v338_v41, 0.0 }
  0x61   :  { %v415_v32 = vadd.f32 %v414_v39, %v413_v20 }
  0x63   :  { %v417_v11 = vadd.f32 %v416_v36, %v415_v32 }
  0x65   :  { %v419_v43 = vadd.f32 %v418_v42, %v417_v11 }
  0x67   :  { %v421_v45 = vadd.f32 %v420_v44, %v419_v43 }
  0x69   :  { %422 = vadd.xlane.f32.xlu1 %v421_v45 }
  0xda   :  { %v372_v12 = vpop.xlane.xlu0 %371 }
  0xdb   :  { %v433_v55 = vrot.slane %v372_v12, %v432_v49 }
  0xdf   :  { %v406_v57 = vpop.xlane.xlu1 %405 }
  0xe0   :  { %v441_v1 = vrot.slane %v406_v57, %v432_v49 }
  0xea   :  { %v389_v51 = vpop.xlane.xlu0 %388 }
  0xeb   :  { %v437_v15 = vrot.slane %v389_v51, %v432_v49 }
  0xed   :  { %v447_v58 = vsel %vm446_vm5, %v437_v15, %v433_v55 }
  0xee   :  { %v449_v59 = vsel %vm448_vm6, %v441_v1, %v447_v58 }
  0xf6   :  { %v423_v0 = vpop.xlane.xlu1 %422 }
  0xf7   :  { %v445_v4 = vrot.slane %v423_v0, %v432_v49 }
  0xf9   :  { %v451_v61 = vsel %vm450_vm7, %v445_v4, %v449_v59 }
  0xfa   :  { %v453_v62 = vadd.f32 %v451_v61, %v290_v60 }
  0xfc   :  { %455 = vst.msk [vmem:[#allocation2] sm:$0xf] %vm40_vm3, %v453_v62 }
 0x103   :  { %v459_v17 = vld [vmem:[#allocation2] sm:$0xf] }
 0x104   :  { %v464_v37 = vmul.f32 0.0009765625, %v459_v17 }
 0x112   :  { %v912_v46 = vpop.f32.mrb[0].mxu0 }
 0x113   :  { %v1009_v48 = vpop.f32.mrb[1].mxu0 }
 0x116   :  { %v692_v50 = vpop.f32.mrb[0].mxu1 }
 0x117   :  { %v1010_v52 = vadd.f32 %v912_v46, %v692_v50  ;;  %v994_v53 = vpop.f32.mrb[1].mxu1 }
 0x119   :  { %v916_v54 = vsel %vm462_vm4, %v1010_v52, 0.0  ;;  %v927_v13 = vmul.f32 2.0, %v1010_v52 }
 0x11a   :  { %v917_v56 = vsel %vm40_vm3, %v916_v54, 0.0 }
 0x11b   :  { %918 = vadd.xlane.f32.xlu0 %v917_v56  ;;  %v920_v63 = vrot.slane %v917_v56, 4 }
 0x11d   :  { %v921_v2 = vadd.f32 %v920_v63, %v917_v56 }
 0x11f   :  { %v922_v3 = vrot.slane %v921_v2, 2 }
 0x121   :  { %v923_v5 = vadd.f32 %v922_v3, %v921_v2 }
 0x123   :  { %v924_v6 = vrot.slane %v923_v5, 1 }
 0x125   :  { %v925_v7 = vadd.f32 %v924_v6, %v923_v5 }
 0x1a8   :  { %v919_v10 = vpop.xlane.xlu0 %918 }
 0x1a9   :  { %v926_v14 = vadd.f32 %v925_v7, %v919_v10 }
 0x1ab   :  { %v928_v19 = vsub.f32 %v926_v14, %v927_v13 }
 0x1ad   :  { %v929_v16 = vmax.f32 %v928_v19, 0.0 }
 0x1af   :  { %v931_v18 = vmul.f32 0.03125, %v929_v16 }
 0x1b1   :  { %v932_v21 = vsub.f32 0.0, %v931_v18 }
 0x1b3   :  { %v933_v38 = vmul.f32 %v932_v21, %v464_v37 }
 0x1b5   :  { %v934_v24 = vsel %vm40_vm3, %v933_v38, 0.0 }
 0x1b6   :  { %935 = vadd.xlane.f32.xlu1 %v934_v24 }
 0x243   :  { %v936_v27 = vpop.xlane.xlu1 %935 }
 0x244   :  { %v937_v22 = vrot.slane %v936_v27, 4 }
 0x246   :  { %v938_v28 = vadd.f32 %v937_v22, %v936_v27 }
 0x248   :  { %v939_v29 = vrot.slane %v938_v28, 2 }
 0x24a   :  { %v940_v8 = vadd.f32 %v939_v29, %v938_v28 }
 0x24c   :  { %v941_v23 = vrot.slane %v940_v8, 1 }
 0x24e   :  { %v942_v25 = vadd.f32 %v941_v23, %v940_v8 }
 0x250   :  { %1019 = vpush %v942_v25 }
 0x281   :  { %s1020_s1 = spop %1019 }
 0x282   :  { %s946_s4 = smul.f32 0.0625, %s1020_s1 }
 0x284   :  { %v947_v30 = vstv %s946_s4 }
 0x285   :  { %v948_v31 = vmul.f32 1.442695, %v947_v30 }
 0x287   :  { %1029 = vpow2.f32 %v948_v31 }
 0x291   :  { %v1030_v26 = vpop.eup %1029 }
 0x292   :  { %1021 = vpush %v1030_v26 }
 0x2c3   :  { %s1022_s5 = spop %1021 }
 0x2c4   :  { %952 = sst [smem:[#allocation8]] %s1022_s5 }
 0x2c5   :  { %1084 = shalt.err (!%p1081_p4)
}
 0x2c6   :  { %s1096_s13 = smov [#allocation8]  }
 0x2c7   :  { %960 = dma.smem_to_hbm %s1096_s13, 16, %s1319_s2, [#allocation5]  }
 0x2c8   :  { %1089 = dma.done.wait [#allocation5], 16  }
 0x2c9   :  { %1090 = vsyncadd [#allocation5], 4294967280 }
 0x2ca   :  { %964 = sfence }
 0x2cb   :  { %965 = vsyncpa [#allocation4], 1 }
 0x2cc   :  { %966 = vsyncpa [#allocation7], 1 }
 0x2cd   :  { %967 = vsyncpa [#allocation5], 1 }

</bundles_post_ra>
